<compile_context>
chip_gen: v7x
topology: tpu7x:2x2x1
jax: 0.10.0
libtpu: 0.0.40
codegen_flags: <defaults>
</compile_context>

<pallas_src>
import jax
import jax.numpy as jnp
from jax.experimental import pallas as pl
from jax.experimental.pallas import tpu as pltpu


def _round_up(v, m):
    return ((v + m - 1) // m) * m


def _pick_k_tile(dim_pad, cap=2048):
    """Largest lane-aligned K tile <= cap that divides dim_pad."""
    if dim_pad <= cap:
        return dim_pad
    for t in (2048, 1024, 512, 256, 128):
        if dim_pad % t == 0:
            return t
    return 128


def _vmem_budget_bytes():
    """~75% of this generation's physical VMEM (v5e/v6e 128 MiB, v7x 64 MiB)."""
    cap = 64 * 1024 * 1024
    try:
        info = pltpu.get_tpu_info()
        cap = int(getattr(info, "vmem_capacity_bytes", cap))
    except Exception:
        pass
    return (cap // 4) * 3


# --------------------------- kernels ---------------------------------------

def _transform_kernel(x_ref, w_ref, o_ref, acc_ref):
    """Xw = X @ W0, K-tiled over the (padded) input-feature dim."""
    k = pl.program_id(1)

    @pl.when(k == 0)
    def _():
        acc_ref[...] = jnp.zeros_like(acc_ref)

    acc_ref[...] += jnp.dot(x_ref[...], w_ref[...],
                            preferred_element_type=jnp.float32)

    @pl.when(k == pl.num_programs(1) - 1)
    def _():
        o_ref[...] = acc_ref[...].astype(o_ref.dtype)


def _make_prop_next_kernel(tk, hw_resident):
    """out = relu( sum_k A[i,k] @ Hw[k,:] + b ) @ Wnext  (layer-0 propagation
    fused with the layer-1 feature transform)."""
    def kernel(a_ref, hw_ref, b_ref, wn_ref, o_ref, acc_ref):
        k = pl.program_id(1)

        @pl.when(k == 0)
        def _():
            acc_ref[...] = jnp.broadcast_to(b_ref[...], acc_ref.shape)

        if hw_resident:
            off = pl.multiple_of(k * tk, tk)
            hw = hw_ref[pl.ds(off, tk), :]
        else:
            hw = hw_ref[...]
        acc_ref[...] += jnp.dot(a_ref[...], hw,
                                preferred_element_type=jnp.float32)

        @pl.when(k == pl.num_programs(1) - 1)
        def _():
            h = jnp.maximum(acc_ref[...], 0.0).astype(jnp.bfloat16)
            o_ref[...] = jnp.dot(h, wn_ref[...],
                                 preferred_element_type=jnp.float32
                                 ).astype(o_ref.dtype)
    return kernel


def _make_prop_proj_kernel(tk, hw_resident):
    """out = (relu(A @ Hw + b) @ Wp0 + bp0) @ Wp1 + bp1  (layer-1 propagation
    fused with the 2-layer projection head; LinearPred act=None -> identity)."""
    def kernel(a_ref, hw_ref, b_ref, wp0_ref, bp0_ref, wp1_ref, bp1_ref,
               o_ref, acc_ref):
        k = pl.program_id(1)

        @pl.when(k == 0)
        def _():
            acc_ref[...] = jnp.broadcast_to(b_ref[...], acc_ref.shape)

        if hw_resident:
            off = pl.multiple_of(k * tk, tk)
            hw = hw_ref[pl.ds(off, tk), :]
        else:
            hw = hw_ref[...]
        acc_ref[...] += jnp.dot(a_ref[...], hw,
                                preferred_element_type=jnp.float32)

        @pl.when(k == pl.num_programs(1) - 1)
        def _():
            h = jnp.maximum(acc_ref[...], 0.0).astype(jnp.bfloat16)
            h = jnp.dot(h, wp0_ref[...],
                        preferred_element_type=jnp.float32) + bp0_ref[...]
            h = jnp.dot(h.astype(jnp.bfloat16), wp1_ref[...],
                        preferred_element_type=jnp.float32) + bp1_ref[...]
            o_ref[...] = h.astype(o_ref.dtype)
    return kernel


# --------------------------- wrapper ----------------------------------------

def graphcl_forward(x, edge_index, params, edge_weight=None):
    """x: [N, in_dim] f32, edge_index: [2, E] int32 (src, dst)."""
    n, in_dim = x.shape
    emb_dim = params["w_gcn0"].shape[1]
    bf16 = jnp.bfloat16
    lane = 128

    # Pad node dim to a multiple of 512 (keeps the A K-tile >= 512 wide ->
    # per-step overhead amortized, lane-dense DMA); feature dims to 128.
    n_pad = _round_up(max(n, 512), 512)
    din_pad = _round_up(in_dim, lane)
    d_pad = _round_up(emb_dim, lane)

    # Row tile: always >= 2 row blocks so the "parallel" axis feeds both v7x
    # TensorCores; K tiles as large as possible (collapse to 1 step if it fits).
    tm = min(512, n_pad // 2)
    tk = _pick_k_tile(n_pad)
    tkx = _pick_k_tile(din_pad)
    grid_m = n_pad // tm
    grid_k = n_pad // tk
    grid_kx = din_pad // tkx

    vmem_budget = _vmem_budget_bytes()

    # Keep Hw fully VMEM-resident when it fits: A is the HBM-bound operand, so
    # re-reading Hw once per row tile is pure extra traffic.
    hw_res_bytes = 2 * n_pad * d_pad * 2                        # 2 buffers, bf16
    prop_fixed = (2 * tm * tk * 2                               # A double-buffer
                  + tm * d_pad * 4                              # f32 accumulator
                  + 2 * tm * d_pad * 4                          # out double-buffer
                  + 2 * 4 * (d_pad * d_pad * 2 + d_pad * 4))    # resident weights
    hw_resident = (prop_fixed + hw_res_bytes) <= vmem_budget
    hw_stream_bytes = 2 * tk * d_pad * 2
    vmem_limit = int(min(vmem_budget,
                         max(32 * 1024 * 1024,
                             prop_fixed
                             + (hw_res_bytes if hw_resident else hw_stream_bytes)
                             + 8 * 1024 * 1024)))

    # --- glue (plain JAX): dense D^-1/2 (A + I) D^-1/2 (GCNConv normalize=True,
    # add_self_loops=True), scattered directly into a bf16 buffer.
    # TODO(synk): for genuinely large/sparse graphs replace this dense NxN build
    # with a CSR row-stripe gather via PrefetchScalarGridSpec.
    idx = jnp.arange(n, dtype=edge_index.dtype)
    src = jnp.concatenate([edge_index[0], idx])
    dst = jnp.concatenate([edge_index[1], idx])
    if edge_weight is None:
        ew = jnp.ones(src.shape, jnp.float32)
    else:
        ew = jnp.concatenate([edge_weight.astype(jnp.float32),
                              jnp.ones((n,), jnp.float32)])
    deg = jnp.zeros((n,), jnp.float32).at[dst].add(ew)
    dinv = jnp.where(deg > 0.0, jax.lax.rsqrt(deg), 0.0)
    vals = (dinv[dst] * ew * dinv[src]).astype(bf16)
    a_bf16 = jnp.zeros((n_pad, n_pad), bf16).at[dst, src].add(vals)

    def pad2(m, r, c, dtype):
        m = m.astype(dtype)
        return jnp.pad(m, ((0, r - m.shape[0]), (0, c - m.shape[1])))

    x_p = pad2(x, n_pad, din_pad, bf16)
    w0 = pad2(params["w_gcn0"], din_pad, d_pad, bf16)
    b0 = pad2(params["b_gcn0"], 1, d_pad, jnp.float32)
    w1 = pad2(params["w_gcn1"], d_pad, d_pad, bf16)
    b1 = pad2(params["b_gcn1"], 1, d_pad, jnp.float32)
    wp0 = pad2(params["w_proj0"], d_pad, d_pad, bf16)
    bp0 = pad2(params["b_proj0"], 1, d_pad, jnp.float32)
    wp1 = pad2(params["w_proj1"], d_pad, d_pad, bf16)
    bp1 = pad2(params["b_proj1"], 1, d_pad, jnp.float32)

    const = lambda i, k: (0, 0)          # resident weights / biases / Hw
    compiler_params = pltpu.CompilerParams(
        dimension_semantics=("parallel", "arbitrary"),
        vmem_limit_bytes=vmem_limit)

    # ---- stage 1: Xw = X @ W0 (bf16 operands, f32 accumulate) ----------------
    xw = pl.pallas_call(
        _transform_kernel,
        out_shape=jax.ShapeDtypeStruct((n_pad, d_pad), bf16),
        grid=(grid_m, grid_kx),
        in_specs=[pl.BlockSpec((tm, tkx), lambda i, k: (i, k)),
                  pl.BlockSpec((tkx, d_pad), lambda i, k: (k, 0))],
        out_specs=pl.BlockSpec((tm, d_pad), lambda i, k: (i, 0)),
        scratch_shapes=[pltpu.VMEM((tm, d_pad), jnp.float32)],
        compiler_params=compiler_params,
        cost_estimate=pl.CostEstimate(
            flops=2 * n_pad * din_pad * d_pad, transcendentals=0,
            bytes_accessed=(n_pad * din_pad * 2 + din_pad * d_pad * 2
                            + n_pad * d_pad * 2)),
    )(x_p, w0)

    hw_spec = (pl.BlockSpec((n_pad, d_pad), const) if hw_resident
               else pl.BlockSpec((tk, d_pad), lambda i, k: (k, 0)))
    hw_reads = 1 if hw_resident else grid_m
    a_spec = pl.BlockSpec((tm, tk), lambda i, k: (i, k))
    out_spec = pl.BlockSpec((tm, d_pad), lambda i, k: (i, 0))

    # ---- stage 2: H1w = relu(A @ Xw + b0) @ W1 -------------------------------
    h1w = pl.pallas_call(
        _make_prop_next_kernel(tk, hw_resident),
        out_shape=jax.ShapeDtypeStruct((n_pad, d_pad), bf16),
        grid=(grid_m, grid_k),
        in_specs=[a_spec, hw_spec,
                  pl.BlockSpec((1, d_pad), const),
                  pl.BlockSpec((d_pad, d_pad), const)],
        out_specs=out_spec,
        scratch_shapes=[pltpu.VMEM((tm, d_pad), jnp.float32)],
        compiler_params=compiler_params,
        cost_estimate=pl.CostEstimate(
            flops=2 * n_pad * n_pad * d_pad + 2 * n_pad * d_pad * d_pad,
            transcendentals=0,
            bytes_accessed=(n_pad * n_pad * 2
                            + hw_reads * n_pad * d_pad * 2
                            + d_pad * d_pad * 2
                            + n_pad * d_pad * 2)),
    )(a_bf16, xw, b0, w1)

    # ---- stage 3: out = (relu(A @ H1w + b1) @ Wp0 + bp0) @ Wp1 + bp1 ---------
    out = pl.pallas_call(
        _make_prop_proj_kernel(tk, hw_resident),
        out_shape=jax.ShapeDtypeStruct((n_pad, d_pad), jnp.float32),
        grid=(grid_m, grid_k),
        in_specs=[a_spec, hw_spec,
                  pl.BlockSpec((1, d_pad), const),
                  pl.BlockSpec((d_pad, d_pad), const),
                  pl.BlockSpec((1, d_pad), const),
                  pl.BlockSpec((d_pad, d_pad), const),
                  pl.BlockSpec((1, d_pad), const)],
        out_specs=out_spec,
        scratch_shapes=[pltpu.VMEM((tm, d_pad), jnp.float32)],
        compiler_params=compiler_params,
        cost_estimate=pl.CostEstimate(
            flops=2 * n_pad * n_pad * d_pad + 4 * n_pad * d_pad * d_pad,
            transcendentals=0,
            bytes_accessed=(n_pad * n_pad * 2
                            + hw_reads * n_pad * d_pad * 2
                            + 2 * d_pad * d_pad * 2
                            + n_pad * d_pad * 4)),
    )(a_bf16, h1w, b1, wp0, bp0, wp1, bp1)

    return out[:n, :emb_dim]


# --------------------------- params / reference ------------------------------

def _xavier_uniform(key, fan_in, fan_out):
    bound = (6.0 / (fan_in + fan_out)) ** 0.5
    return jax.random.uniform(key, (fan_in, fan_out), jnp.float32, -bound, bound)


def init_params(key, in_dim, emb_dim):
    k0, k1, k2, k3 = jax.random.split(key, 4)
    return {
        "w_gcn0": _xavier_uniform(k0, in_dim, emb_dim),
        "b_gcn0": jnp.zeros((1, emb_dim), jnp.float32),
        "w_gcn1": _xavier_uniform(k1, emb_dim, emb_dim),
        "b_gcn1": jnp.zeros((1, emb_dim), jnp.float32),
        "w_proj0": _xavier_uniform(k2, emb_dim, emb_dim),
        "b_proj0": jnp.zeros((1, emb_dim), jnp.float32),
        "w_proj1": _xavier_uniform(k3, emb_dim, emb_dim),
        "b_proj1": jnp.zeros((1, emb_dim), jnp.float32),
    }


def _reference(x, edge_index, params):
    """Pure-JAX f32 reference of the same forward pass (ReLU on both GCN
    layers per last_act=True default; no activation in the projection head)."""
    n = x.shape[0]
    idx = jnp.arange(n, dtype=edge_index.dtype)
    src = jnp.concatenate([edge_index[0], idx])
    dst = jnp.concatenate([edge_index[1], idx])
    ew = jnp.ones(src.shape, jnp.float32)
    deg = jnp.zeros((n,), jnp.float32).at[dst].add(ew)
    dinv = jnp.where(deg > 0.0, jax.lax.rsqrt(deg), 0.0)
    a = jnp.zeros((n, n), jnp.float32).at[dst, src].add(dinv[dst] * ew * dinv[src])
    h = jnp.maximum(a @ (x @ params["w_gcn0"]) + params["b_gcn0"], 0.0)
    h = jnp.maximum(a @ (h @ params["w_gcn1"]) + params["b_gcn1"], 0.0)
    h = h @ params["w_proj0"] + params["b_proj0"]
    h = h @ params["w_proj1"] + params["b_proj1"]
    return h


if __name__ == "__main__":
    N, IN_DIM, EMB_DIM = 16, 8, 32

    key = jax.random.PRNGKey(0)
    kx, kp = jax.random.split(key)

    x = jax.random.normal(kx, (N, IN_DIM), jnp.float32)

    # deterministic graph: bidirectional ring over N nodes
    idx = jnp.arange(N, dtype=jnp.int32)
    src = jnp.concatenate([idx, (idx + 1) % N])
    dst = jnp.concatenate([(idx + 1) % N, idx])
    edge_index = jnp.stack([src, dst])          # [2, 2N]

    params = init_params(kp, IN_DIM, EMB_DIM)

    h = graphcl_forward(x, edge_index, params)
    jax.block_until_ready(h)
    assert h.shape == (N, EMB_DIM)
    assert bool(jnp.all(jnp.isfinite(h)))

    ref = _reference(x, edge_index, params)
    max_err = float(jnp.max(jnp.abs(h - ref)))
    assert max_err < 0.1, f"max abs err vs f32 reference: {max_err}"
    print("KERNEL_OK")
</pallas_src>

<mosaic_0001>
module attributes {stable_mosaic.version = 11 : i64} {
  func.func @_transform_kernel(%arg0: i32, %arg1: i32, %arg2: memref<256x128xbf16, #tpu.memory_space<vmem>>, %arg3: memref<128x128xbf16, #tpu.memory_space<vmem>>, %arg4: memref<256x128xbf16, #tpu.memory_space<vmem>>, %arg5: memref<256x128xf32, #tpu.memory_space<vmem>>) attributes {dimension_semantics = [#tpu.dimension_semantics<parallel>, #tpu.dimension_semantics<arbitrary>], iteration_bounds = array<i64: 2, 1>, scalar_prefetch = 0 : i64, scratch_operands = 1 : i64, tpu.core_type = #tpu.core_type<tc>, window_params = [{transform_indices = @transform_0, window_bounds = array<i64: 256, 128>}, {transform_indices = @transform_1, window_bounds = array<i64: 128, 128>}, {transform_indices = @transform_2, window_bounds = array<i64: 256, 128>}]} {
    %c0_i32 = arith.constant 0 : i32
    %0 = arith.cmpi eq, %arg1, %c0_i32 : i32
    %1 = arith.extui %0 : i1 to i32
    %c0_i32_0 = arith.constant 0 : i32
    %2 = arith.cmpi ne, %1, %c0_i32_0 : i32
    scf.if %2 {
      %cst_10 = arith.constant 0.000000e+00 : f32
      %12 = vector.broadcast %cst_10 : f32 to vector<256x128xf32>
      %c0_11 = arith.constant 0 : index
      %c0_12 = arith.constant 0 : index
      %13 = vector.load %arg5[%c0_11, %c0_12] : memref<256x128xf32, #tpu.memory_space<vmem>>, vector<256x128xf32>
      tpu.vector_store %arg5[%c0_11, %c0_12], %12 {strides = array<i32>} : memref<256x128xf32, #tpu.memory_space<vmem>>, vector<256x128xf32>,
    } else {
    }
    %c0 = arith.constant 0 : index
    %c0_1 = arith.constant 0 : index
    %3 = vector.load %arg5[%c0, %c0_1] : memref<256x128xf32, #tpu.memory_space<vmem>>, vector<256x128xf32>
    %c0_2 = arith.constant 0 : index
    %c0_3 = arith.constant 0 : index
    %4 = vector.load %arg2[%c0_2, %c0_3] : memref<256x128xbf16, #tpu.memory_space<vmem>>, vector<256x128xbf16>
    %c0_4 = arith.constant 0 : index
    %c0_5 = arith.constant 0 : index
    %5 = vector.load %arg3[%c0_4, %c0_5] : memref<128x128xbf16, #tpu.memory_space<vmem>>, vector<128x128xbf16>
    %cst = arith.constant dense<0.000000e+00> : vector<256x128xf32>
    %6 = tpu.matmul %4, %5, %cst {dimension_numbers = #tpu.dot_dimension_numbers<[1], [0], [0], [1], [0, 0, 1, 1], [], []>} : vector<256x128xbf16>, vector<128x128xbf16>, vector<256x128xf32> -> vector<256x128xf32>
    %7 = arith.addf %3, %6 : vector<256x128xf32>
    %c0_6 = arith.constant 0 : index
    %c0_7 = arith.constant 0 : index
    %8 = vector.load %arg5[%c0_6, %c0_7] : memref<256x128xf32, #tpu.memory_space<vmem>>, vector<256x128xf32>
    tpu.vector_store %arg5[%c0_6, %c0_7], %7 {strides = array<i32>} : memref<256x128xf32, #tpu.memory_space<vmem>>, vector<256x128xf32>,
    %c0_i32_8 = arith.constant 0 : i32
    %9 = arith.cmpi eq, %arg1, %c0_i32_8 : i32
    %10 = arith.extui %9 : i1 to i32
    %c0_i32_9 = arith.constant 0 : i32
    %11 = arith.cmpi ne, %10, %c0_i32_9 : i32
    scf.if %11 {
      %c0_10 = arith.constant 0 : index
      %c0_11 = arith.constant 0 : index
      %12 = vector.load %arg5[%c0_10, %c0_11] : memref<256x128xf32, #tpu.memory_space<vmem>>, vector<256x128xf32>
      %13 = arith.truncf %12 : vector<256x128xf32> to vector<256x128xbf16>
      %c0_12 = arith.constant 0 : index
      %c0_13 = arith.constant 0 : index
      %14 = vector.load %arg4[%c0_12, %c0_13] : memref<256x128xbf16, #tpu.memory_space<vmem>>, vector<256x128xbf16>
      tpu.vector_store %arg4[%c0_12, %c0_13], %13 {strides = array<i32>} : memref<256x128xbf16, #tpu.memory_space<vmem>>, vector<256x128xbf16>,
    } else {
    }
    return
  }
  func.func @transform_0(%arg0: i32, %arg1: i32) -> (i32, i32) {
    %c0_i32 = arith.constant 0 : i32
    return %arg0, %arg1 : i32, i32
  }
  func.func @transform_1(%arg0: i32, %arg1: i32) -> (i32, i32) {
    %c0_i32 = arith.constant 0 : i32
    %c0_i32_0 = arith.constant 0 : i32
    return %arg1, %c0_i32 : i32, i32
  }
  func.func @transform_2(%arg0: i32, %arg1: i32) -> (i32, i32) {
    %c0_i32 = arith.constant 0 : i32
    %c0_i32_0 = arith.constant 0 : i32
    return %arg0, %c0_i32 : i32, i32
  }
}

</mosaic_0001>

<bundles_post_ra>
// kernel: tpu_custom_call.1
= control target key start
LH: loop header
LB: loop body
LE: loop exit
PB: predicated region body
PF: predicated region fallthrough
CT: control target
= control target key end

     0   :  { %7 = vsyncpa [#allocation4], 0  ;;  %s1818_s0 = inlined_call_operand.hbm [shape: bf16[512,128], index: 0, kind: input, shape index: {}]   ;;  %s1819_s1 = inlined_call_operand.hbm [shape: bf16[128,128], index: 1, kind: input, shape index: {}]   ;;  %s1820_s2 = inlined_call_operand.hbm [shape: bf16[512,128], index: 2, kind: output, shape index: {}]  }
   0x1   :  { %9 = vsyncpa [#allocation4 + $0x1], 0 }
   0x2   :  { %10 = vsyncpa [#allocation7], 0 }
   0x3   :  { %11 = vsyncpa [#allocation5], 0 }
   0x4   :  { %13 = vsyncpa [#allocation5 + $0x1], 0  ;;  %s1552_s9 = smov 0   ;;  %s1554_s10 = smov 0  }
   0x5   :  { %s1556_s11 = smov 0   ;;  %s1558_s12 = smov 0  }
   0x6   :  { %s1560_s13 = smov 0   ;;  %s1562_s14 = smov 0  }
   0x7 LB: > { %s993_s15 = sadd.s32 4294967295, %s1528_s14   ;;  %s994_s16 = sadd.s32 4294967294, %s1528_s14   ;;  %s1528_s14 = sphi %s1562_s14, %s19_s14   ;;  %s1524_s13 = sphi %s1560_s13, %s1844_s13   ;;  %s1520_s12 = sphi %s1558_s12, %s1843_s12   ;;  %s1516_s11 = sphi %s1556_s11, %s1842_s11   ;;  %s1512_s10 = sphi %s1554_s10, %s1841_s10   ;;  %s1508_s9 = sphi %s1552_s9, %s1840_s9  }
   0x8   : > { %p53_p0 = scmp.ne.s32.totalorder %s1512_s10, %s1508_s9  ;;  %p1586_p1 = scmp.eq.s32.totalorder %s993_s15, 0 }
   0x9   : > { %p1590_p2 = scmp.eq.s32.totalorder %s993_s15, 1  ;;  %p109_p3 = scmp.eq.s32.totalorder %s994_s16, 1 }
   0xa   : > { %s1825_s17 = scalar_select %p1586_p1, 1, 0 }
   0xb   : > { %s1826_s18 = scalar_select %p1590_p2, 1, 0 }
   0xc   : > { %p1596_p4 = por %p1586_p1, %p53_p0  ;;  %p995_p5 = scmp.ge.s32.totalorder %s1528_s14, 1 }
   0xd   : > { %p1601_p6 = por %p109_p3, %p53_p0  ;;  %p116_p7 = scmp.lt.s32.totalorder %s1528_s14, 3 }
   0xe   : > { %s1827_s19 = scalar_select %p1596_p4, 1, 0 }
   0xf   : > { %s1828_s20 = scalar_select %p1601_p6, 1, 0 }
  0x10   : > { %p1606_p8 = pnand %p995_p5, %p116_p7  ;;  %s1530_s22 = smov [#allocation6]  }
  0x11   : > { %s131_s23 = sshll.u32 %s1530_s22, 4  ;;  %s31_s25 = sadd.s32 1, %s1524_s13  ;;  %s132_s23 = int_to_ptr.vmem [resolvable:$true] %s131_s23 }
  0x12   : > { %s1829_s21 = scalar_select %p1606_p8, 1, 0 }
  0x13   : > { %p1291_p9 = pneg %p1606_p8  ;;  %s1384_s28 = scalar_lea.hbm %s1819_s1, 1024 }
  0x14   : > { %p1385_p12 = scmp.ne.s32.totalorder %s1819_s1, %s1384_s28  ;;  %p1391_p5 = scmp.lt.u32.totalorder %s1384_s28, %s1819_s1 }
  0x15   : > { %p1615_p11 = pnand %p1291_p9, %p1586_p1 }
  0x17   : > { %p1386_p13 = pneg %p1615_p11 }
  0x19   : > { %p1387_p0 = pnand %p1386_p13, %p1385_p12 }
  0x1b   : > { %p1388_p3 = pneg %p1387_p0 }
  0x1d   : > { %p1393_p7 = pnand %p1391_p5, %p1388_p3 }
  0x1f   : > { %1396 = shalt.err (!%p1393_p7)
}
  0x20   : > { %s1397_s5 = scalar_lea.vmem %s132_s23, 1024  ;;  %p1405_p1 = scmp.lt.s32.totalorder %s132_s23, %s132_s23 }
  0x21   : > { %p1398_p9 = scmp.ne.s32.totalorder %s132_s23, %s1397_s5  ;;  %p1406_p4 = scmp.lt.s32.totalorder %s1397_s5, %s1397_s5 }
  0x23   : > { %p1400_p10 = pnand %p1398_p9, %p1386_p13  ;;  %p1407_p8 = por %p1406_p4, %p1405_p1 }
  0x25   : > { %p1401_p6 = pneg %p1400_p10 }
  0x27   : > { %p1408_p2 = pnand %p1407_p8, %p1401_p6 }
  0x29   : > { %1411 = shalt.err (!%p1408_p2)
}
  0x2a   : > { %s1531_s6 = smov 64   ;;  %s1532_s7 = smov 4  }
  0x2b   : > { %1294 = dma.hbm_to_vmem [thread:$0]  (!%p1615_p11), %s1819_s1, 1024, %s132_s23, [#allocation7], %s1531_s6, %s1531_s6, %s1532_s7  }
  0x2c   : > { %p33_p1 = scmp.ge.s32.totalorder %s31_s25, 2  ;;  %s40_s16 = sadd.s32 1, %s1516_s11 }
  0x2d   : > { %p47_p2 = scmp.ne.s32.totalorder %s1516_s11, %s1512_s10  ;;  %p48_p4 = scmp.eq.s32.totalorder %s1528_s14, 0 }
  0x2e   : > { %s1846_s25 = smov (%p33_p1, %s31_s25), 0  ;;  %p1832_p8 = scmp.ne.s32.totalorder %s1826_s18, 0 }
  0x2f   : > { %p1645_p6 = por %p48_p4, %p47_p2  ;;  %s35_s26 = ssub.s32 %s1524_s13, %s1846_s25 }
  0x30   : > { %p1651_p10 = por %p1832_p8, %p47_p2  ;;  %p1304_p12 = scmp.lt.s32.totalorder %s1528_s14, 2 }
  0x31   : > { %p38_p11 = scmp.eq.s32.totalorder %s35_s26, 0  ;;  %s145_s23 = sand.u32 1, %s1516_s11  }
  0x32   : > { %s998_s27 = sshll.u32 %s145_s23, 7  ;;  %s1066_s29 = sshll.u32 %s1524_s13, 11 }
  0x33   : > { %s1660_s28 = scalar_select %p38_p11, %s1516_s11, %s40_s16  }
  0x34   : > { %s1666_s4 = scalar_lea.hbm %s1818_s0, %s1066_s29  ;;  %s149_s18 = scalar_lea.vmem [#allocation3], %s998_s27 }
  0x35   : > { %s157_s5 = sshll.u32 %s149_s18, 4  ;;  %p1672_p13 = pnand %p1304_p12, %p1645_p6  ;;  %s1668_s5 = int_to_ptr.vmem [resolvable:$true] %s157_s5 }
  0x36   : > { %s1676_s15 = scalar_lea.sflag [#allocation4], %s145_s23  ;;  %s1412_s16 = scalar_lea.hbm %s1666_s4, 2048 }
  0x37   : > { %p1413_p0 = scmp.ne.s32.totalorder %s1666_s4, %s1412_s16  ;;  %p1414_p3 = pneg %p1672_p13 }
  0x38   : > { %s1417_s22 = scalar_lea.hbm %s1818_s0, 4096  ;;  %p1418_p9 = scmp.lt.u32.totalorder %s1666_s4, %s1818_s0 }
  0x39   : > { %p1415_p5 = pnand %p1414_p3, %p1413_p0  ;;  %p1419_p1 = scmp.lt.u32.totalorder %s1417_s22, %s1412_s16 }
  0x3a   : > { %p1421_p4 = scmp.lt.u32.totalorder %s1412_s16, %s1666_s4 }
  0x3b   : > { %p1416_p7 = pneg %p1415_p5  ;;  %p1420_p2 = por %p1419_p1, %p1418_p9 }
  0x3d   : > { %p1422_p6 = por %p1421_p4, %p1420_p2 }
  0x3f   : > { %p1423_p8 = pnand %p1422_p6, %p1416_p7 }
  0x41   : > { %1426 = shalt.err (!%p1423_p8)
}
  0x42   : > { %s1427_s23 = scalar_lea.vmem %s1668_s5, 2048  ;;  %s1533_s3 = smov [#allocation3]  }
  0x43   : > { %p1428_p12 = scmp.ne.s32.totalorder %s1668_s5, %s1427_s23  ;;  %s1432_s18 = sshll.u32 %s1533_s3, 4  ;;  %s1433_s18 = int_to_ptr.vmem [resolvable:$false] %s1432_s18 }
  0x44   : > { %s1434_s26 = scalar_lea.vmem %s1433_s18, 4096  ;;  %p1435_p5 = scmp.lt.s32.totalorder %s1668_s5, %s1433_s18 }
  0x45   : > { %p1430_p11 = pnand %p1428_p12, %p1414_p3  ;;  %p1436_p9 = scmp.lt.s32.totalorder %s1434_s26, %s1427_s23 }
  0x47   : > { %p1431_p0 = pneg %p1430_p11  ;;  %p1437_p1 = por %p1436_p9, %p1435_p5 }
  0x49   : > { %p1438_p2 = pnand %p1437_p1, %p1431_p0 }
  0x4b   : > { %1441 = shalt.err (!%p1438_p2)
}
  0x4c   : > { %1298 = dma.hbm_to_vmem [thread:$0]  (!%p1672_p13), %s1666_s4, 2048, %s1668_s5, %s1676_s15, %s1531_s6, %s1531_s6, %s1532_s7  }
  0x4d   : > { %p1835_p3 = scmp.ne.s32.totalorder %s1829_s21, 0 }
  0x4e   : > { %s1710_s16 = sand.u32 (!%p1835_p3), 1, %s1512_s10   ;;  %p1836_p7 = scmp.ne.s32.totalorder (!%p1835_p3), %s1827_s19, 0 }
  0x4f   : > { %169 = sbr.rel (%p1835_p3) target bundleno = 379 (0x17b), region = 28  ;;  %s1002_s27 = sshll.u32 (!%p1835_p3), %s1710_s16, 7 }
  0x50   : > { %s172_s22 = scalar_lea.sflag (!%p1835_p3), [#allocation4], %s1710_s16  ;;  %s1716_s8 = scalar_lea.vmem (!%p1835_p3), [#allocation3], %s1002_s27 }
  0x56   : > { %1495 = dma.done.wait (%p1836_p7), %s172_s22, 2048  }
  0x57   : > { %1497 = vsyncadd (%p1836_p7), %s172_s22, 4294965248  ;;  %p1837_p13 = scmp.ne.s32.totalorder %s1825_s17, 0 }
  0x59   : > { %1499 = dma.done.wait (%p1837_p13), [#allocation7], 1024  }
  0x5a   : > { %1501 = vsyncadd (%p1837_p13), [#allocation7], 4294966272  ;;  %v1360_v0 = vld [vmem:[#allocation6] sm:$0xff]   ;;  %v1361_v1 = vld [vmem:[#allocation6 + $0x8] sm:$0xff]   ;;  %s1744_s17 = scalar_lea.vmem [#allocation8], %s1002_s27  ;;  %s1099_s19 = sshll.u32 %s1520_s12, 11 }
  0x5b   : > { %1219 = vmatprep.subr.bf16.mxu0 %v1360_v0  ;;  %1267 = vmatprep.subr.bf16.mxu1 %v1360_v0  ;;  %v1362_v2 = vld [vmem:[#allocation6 + $0x10] sm:$0xff]   ;;  %v1363_v3 = vld [vmem:[#allocation6 + $0x18] sm:$0xff]   ;;  %v1368_v4 = vld [vmem:[%s1716_s8] sm:$0xff]   ;;  %s898_s21 = sshll.u32 %s1744_s17, 4  ;;  %s1763_s4 = scalar_lea.hbm %s1820_s2, %s1099_s19  ;;  %s1765_s21 = int_to_ptr.vmem [resolvable:$true] %s898_s21 }
  0x5c   : > { %1220 = vmatpush3.bf16.msra.mxu0 %v1360_v0  ;;  %1275 = vmatpush3.bf16.msra.mxu1 %v1360_v0  ;;  %v1369_v5 = vld [vmem:[%s1716_s8 + $0x40] sm:$0xff]   ;;  %v1365_v7 = vld [vmem:[#allocation6 + $0x28] sm:$0xff]   ;;  %v1366_v8 = vld [vmem:[#allocation6 + $0x30] sm:$0xff]   ;;  %s885_s12 = scalar_lea.sflag [#allocation5], %s1710_s16  ;;  %s1442_s5 = scalar_lea.vmem %s1765_s21, 2048 }
  0x5d   : > { %1221 = vmatprep.subr.bf16.mxu0 %v1361_v1  ;;  %1268 = vmatprep.subr.bf16.mxu1 %v1361_v1  ;;  %v1364_v6 = vld [vmem:[#allocation6 + $0x20] sm:$0xff]   ;;  %v1367_v9 = vld [vmem:[#allocation6 + $0x38] sm:$0xff]   ;;  %v1370_v10 = vld [vmem:[%s1716_s8 + $0x8] sm:$0xff]   ;;  %p1443_p4 = scmp.ne.s32.totalorder %s1765_s21, %s1442_s5  ;;  %s1534_s15 = smov [#allocation8]  }
  0x5e   : > { %1235 = vmatprep.mubr.bf16.mxu0 %v1368_v4  ;;  %1251 = vmatprep.mubr.bf16.mxu1 %v1369_v5  ;;  %v1371_v11 = vld [vmem:[%s1716_s8 + $0x48] sm:$0xff]   ;;  %v1372_v12 = vld [vmem:[%s1716_s8 + $0x10] sm:$0xff]   ;;  %v1374_v14 = vld [vmem:[%s1716_s8 + $0x18] sm:$0xff]   ;;  %s1446_s29 = sshll.u32 %s1534_s15, 4  ;;  %s1447_s29 = int_to_ptr.vmem [resolvable:$false] %s1446_s29 }
  0x5f   : > { %v1373_v13 = vld [vmem:[%s1716_s8 + $0x50] sm:$0xff]   ;;  %v1375_v15 = vld [vmem:[%s1716_s8 + $0x58] sm:$0xff]   ;;  %v1376_v16 = vld [vmem:[%s1716_s8 + $0x20] sm:$0xff]   ;;  %p1444_p6 = pnand %p1443_p4, %p1651_p10  ;;  %s1448_s30 = scalar_lea.vmem %s1447_s29, 4096 }
  0x60   : > { %1222 = vmatpush3.bf16.msra.mxu0 %v1361_v1  ;;  %1276 = vmatpush3.bf16.msra.mxu1 %v1361_v1  ;;  %v1377_v17 = vld [vmem:[%s1716_s8 + $0x60] sm:$0xff]   ;;  %v1378_v18 = vld [vmem:[%s1716_s8 + $0x28] sm:$0xff]   ;;  %v1380_v20 = vld [vmem:[%s1716_s8 + $0x30] sm:$0xff]   ;;  %p1449_p12 = scmp.lt.s32.totalorder %s1765_s21, %s1447_s29  ;;  %p1450_p11 = scmp.lt.s32.totalorder %s1448_s30, %s1442_s5 }
  0x61   : > { %1223 = vmatprep.subr.bf16.mxu0 %v1362_v2  ;;  %1269 = vmatprep.subr.bf16.mxu1 %v1362_v2  ;;  %v1379_v19 = vld [vmem:[%s1716_s8 + $0x68] sm:$0xff]   ;;  %v1381_v21 = vld [vmem:[%s1716_s8 + $0x70] sm:$0xff]   ;;  %v1382_v22 = vld [vmem:[%s1716_s8 + $0x38] sm:$0xff]   ;;  %p1445_p8 = pneg %p1444_p6 }
  0x62   : > { %v1383_v23 = vld [vmem:[%s1716_s8 + $0x78] sm:$0xff]   ;;  %p1451_p0 = por %p1450_p11, %p1449_p12 }
  0x64   : > { %1224 = vmatpush3.bf16.msra.mxu0 %v1362_v2  ;;  %1277 = vmatpush3.bf16.msra.mxu1 %v1362_v2  ;;  %p1452_p5 = pnand %p1451_p0, %p1445_p8 }
  0x65   : > { %1225 = vmatprep.subr.bf16.mxu0 %v1363_v3  ;;  %1270 = vmatprep.subr.bf16.mxu1 %v1363_v3 }
  0x68   : > { %1226 = vmatpush3.bf16.msra.mxu0 %v1363_v3  ;;  %1278 = vmatpush3.bf16.msra.mxu1 %v1363_v3 }
  0x69   : > { %1227 = vmatprep.subr.bf16.mxu0 %v1364_v6  ;;  %1271 = vmatprep.subr.bf16.mxu1 %v1364_v6 }
  0x6c   : > { %1228 = vmatpush3.bf16.msra.mxu0 %v1364_v6  ;;  %1279 = vmatpush3.bf16.msra.mxu1 %v1364_v6 }
  0x6d   : > { %1229 = vmatprep.subr.bf16.mxu0 %v1365_v7  ;;  %1272 = vmatprep.subr.bf16.mxu1 %v1365_v7 }
  0x70   : > { %1230 = vmatpush3.bf16.msra.mxu0 %v1365_v7  ;;  %1280 = vmatpush3.bf16.msra.mxu1 %v1365_v7 }
  0x71   : > { %1231 = vmatprep.subr.bf16.mxu0 %v1366_v8  ;;  %1273 = vmatprep.subr.bf16.mxu1 %v1366_v8 }
  0x74   : > { %1232 = vmatpush3.bf16.msra.mxu0 %v1366_v8  ;;  %1281 = vmatpush3.bf16.msra.mxu1 %v1366_v8 }
  0x75   : > { %1233 = vmatprep.subr.bf16.mxu0 %v1367_v9  ;;  %1274 = vmatprep.subr.bf16.mxu1 %v1367_v9 }
  0x78   : > { %1234 = vmatpush3.bf16.msra.mxu0 %v1367_v9  ;;  %1282 = vmatpush3.bf16.msra.mxu1 %v1367_v9 }
  0x7b   : > { %1236 = vmatmul.mubr.bf16.vlgmr.msra.gmra.mrb[0].mxu0 %v1370_v10  ;;  %1252 = vmatmul.mubr.bf16.vlgmr.msra.gmra.mrb[0].mxu1 %v1371_v11 }
  0x7c   : > { %1239 = vmatprep.mubr.bf16.mxu0 %v1372_v12  ;;  %1255 = vmatprep.mubr.bf16.mxu1 %v1373_v13 }
  0x83   : > { %1240 = vmatmul.mubr.bf16.gmra.mrb[4].mxu0 %v1374_v14  ;;  %1256 = vmatmul.mubr.bf16.gmra.mrb[4].mxu1 %v1375_v15 }
  0x84   : > { %1243 = vmatprep.mubr.bf16.mxu0 %v1376_v16  ;;  %1259 = vmatprep.mubr.bf16.mxu1 %v1377_v17 }
  0x8b   : > { %1244 = vmatmul.mubr.bf16.gmra.mrb[8].mxu0 %v1378_v18  ;;  %1260 = vmatmul.mubr.bf16.gmra.mrb[8].mxu1 %v1379_v19 }
  0x8c   : > { %1247 = vmatprep.mubr.bf16.mxu0 %v1380_v20  ;;  %1263 = vmatprep.mubr.bf16.mxu1 %v1381_v21 }
  0x93   : > { %1248 = vmatmul.mubr.bf16.gmra.mrb[12].mxu0 %v1382_v22  ;;  %1264 = vmatmul.mubr.bf16.gmra.mrb[12].mxu1 %v1383_v23 }
 0x14e   : > { %v1237_v24 = vpop.f32.mrb[0].mxu0  ;;  %v1253_v25 = vpop.f32.mrb[0].mxu1 }
 0x14f   : > { %v498_v26 = vpop.f32.mrb[1].mxu0  ;;  %v562_v27 = vpop.f32.mrb[1].mxu1 }
 0x150   : > { %v1238_v28 = vpop.f32.mrb[2].mxu0  ;;  %v1254_v29 = vpop.f32.mrb[2].mxu1 }
 0x151   : > { %v1108_v30 = vpack.c.bf16 %v1238_v28, %v1237_v24  ;;  %v1148_v31 = vpack.c.bf16 %v1254_v29, %v1253_v25  ;;  %v501_v32 = vpop.f32.mrb[3].mxu0  ;;  %v565_v33 = vpop.f32.mrb[3].mxu1 }
 0x152   : > { %v1103_v34 = vpack.c.bf16 %v501_v32, %v498_v26  ;;  %v1143_v35 = vpack.c.bf16 %v565_v33, %v562_v27 }
 0x153   : > { %1180 = vst [vmem:[%s1744_s17 + $0x8] sm:$0xff] %v1108_v30   ;;  %1188 = vst [vmem:[%s1744_s17 + $0x48] sm:$0xff] %v1148_v31  }
 0x154   : > { %1104 = vst [vmem:[%s1744_s17] sm:$0xff] %v1103_v34   ;;  %1187 = vst [vmem:[%s1744_s17 + $0x40] sm:$0xff] %v1143_v35  }
 0x156   : > { %v1241_v36 = vpop.f32.mrb[4].mxu0  ;;  %v1257_v37 = vpop.f32.mrb[4].mxu1 }
 0x157   : > { %v514_v38 = vpop.f32.mrb[5].mxu0  ;;  %v578_v39 = vpop.f32.mrb[5].mxu1 }
 0x158   : > { %v1242_v40 = vpop.f32.mrb[6].mxu0  ;;  %v1258_v41 = vpop.f32.mrb[6].mxu1 }
 0x159   : > { %v1118_v42 = vpack.c.bf16 %v1242_v40, %v1241_v36  ;;  %v1158_v43 = vpack.c.bf16 %v1258_v41, %v1257_v37  ;;  %v517_v44 = vpop.f32.mrb[7].mxu0  ;;  %v581_v45 = vpop.f32.mrb[7].mxu1 }
 0x15a   : > { %v1113_v46 = vpack.c.bf16 %v517_v44, %v514_v38  ;;  %v1153_v47 = vpack.c.bf16 %v581_v45, %v578_v39 }
 0x15b   : > { %1182 = vst [vmem:[%s1744_s17 + $0x18] sm:$0xff] %v1118_v42   ;;  %1190 = vst [vmem:[%s1744_s17 + $0x58] sm:$0xff] %v1158_v43  }
 0x15c   : > { %1181 = vst [vmem:[%s1744_s17 + $0x10] sm:$0xff] %v1113_v46   ;;  %1189 = vst [vmem:[%s1744_s17 + $0x50] sm:$0xff] %v1153_v47  }
 0x15e   : > { %v1245_v48 = vpop.f32.mrb[8].mxu0  ;;  %v1261_v49 = vpop.f32.mrb[8].mxu1 }
 0x15f   : > { %v530_v50 = vpop.f32.mrb[9].mxu0  ;;  %v594_v51 = vpop.f32.mrb[9].mxu1 }
 0x160   : > { %v1246_v52 = vpop.f32.mrb[10].mxu0  ;;  %v1262_v53 = vpop.f32.mrb[10].mxu1 }
 0x161   : > { %v1128_v54 = vpack.c.bf16 %v1246_v52, %v1245_v48  ;;  %v1168_v55 = vpack.c.bf16 %v1262_v53, %v1261_v49  ;;  %v533_v56 = vpop.f32.mrb[11].mxu0  ;;  %v597_v57 = vpop.f32.mrb[11].mxu1 }
 0x162   : > { %v1123_v58 = vpack.c.bf16 %v533_v56, %v530_v50  ;;  %v1163_v59 = vpack.c.bf16 %v597_v57, %v594_v51 }
 0x163   : > { %1184 = vst [vmem:[%s1744_s17 + $0x28] sm:$0xff] %v1128_v54   ;;  %1192 = vst [vmem:[%s1744_s17 + $0x68] sm:$0xff] %v1168_v55  }
 0x164   : > { %1183 = vst [vmem:[%s1744_s17 + $0x20] sm:$0xff] %v1123_v58   ;;  %1191 = vst [vmem:[%s1744_s17 + $0x60] sm:$0xff] %v1163_v59  }
 0x166   : > { %v1249_v60 = vpop.f32.mrb[12].mxu0  ;;  %v1265_v61 = vpop.f32.mrb[12].mxu1 }
 0x167   : > { %v546_v62 = vpop.f32.mrb[13].mxu0  ;;  %v610_v63 = vpop.f32.mrb[13].mxu1 }
 0x168   : > { %v1250_v0 = vpop.f32.mrb[14].mxu0  ;;  %v1266_v1 = vpop.f32.mrb[14].mxu1 }
 0x169   : > { %v1138_v2 = vpack.c.bf16 %v1250_v0, %v1249_v60  ;;  %v1178_v3 = vpack.c.bf16 %v1266_v1, %v1265_v61  ;;  %v549_v4 = vpop.f32.mrb[15].mxu0  ;;  %v613_v5 = vpop.f32.mrb[15].mxu1 }
 0x16a   : > { %v1133_v6 = vpack.c.bf16 %v549_v4, %v546_v62  ;;  %v1173_v7 = vpack.c.bf16 %v613_v5, %v610_v63 }
 0x16b   : > { %1186 = vst [vmem:[%s1744_s17 + $0x38] sm:$0xff] %v1138_v2   ;;  %1194 = vst [vmem:[%s1744_s17 + $0x78] sm:$0xff] %v1178_v3  }
 0x16c   : > { %1185 = vst [vmem:[%s1744_s17 + $0x30] sm:$0xff] %v1133_v6   ;;  %1193 = vst [vmem:[%s1744_s17 + $0x70] sm:$0xff] %v1173_v7  }
 0x16d   : > { %1455 = shalt.err (!%p1452_p5)
}
 0x16e   : > { %s1456_s23 = scalar_lea.hbm %s1763_s4, 2048  ;;  %s1460_s26 = scalar_lea.hbm %s1820_s2, 4096 }
 0x16f   : > { %p1457_p9 = scmp.ne.s32.totalorder %s1763_s4, %s1456_s23  ;;  %p1461_p3 = scmp.lt.u32.totalorder %s1763_s4, %s1820_s2 }
 0x170   : > { %p1462_p7 = scmp.lt.u32.totalorder %s1460_s26, %s1456_s23  ;;  %p1464_p4 = scmp.lt.u32.totalorder %s1456_s23, %s1763_s4 }
 0x171   : > { %p1458_p1 = pnand %p1457_p9, %p1651_p10 }
 0x172   : > { %p1463_p13 = por %p1462_p7, %p1461_p3 }
 0x173   : > { %p1459_p2 = pneg %p1458_p1 }
 0x174   : > { %p1465_p6 = por %p1464_p4, %p1463_p13 }
 0x176   : > { %p1466_p8 = pnand %p1465_p6, %p1459_p2 }
 0x178   : > { %1469 = shalt.err (!%p1466_p8)
}
 0x179   : > { %s1535_s8 = smov 64   ;;  %s1536_s17 = smov 4  }
 0x17a   : > { %1289 = dma.vmem_to_hbm [thread:$0]  (%p1651_p10), %s1765_s21, 2048, %s1763_s4, %s885_s12, %s1535_s8, %s1535_s8, %s1536_s17  }
 0x17b PF: > { %s913_s19 = sand.u32 1, %s1508_s9   ;;  %p1838_p12 = scmp.ne.s32.totalorder %s1828_s20, 0 }
 0x17c   : > { %p1839_p11 = scmp.ge.s32.totalorder %s1528_s14, 2  ;;  %s914_s6 = scalar_lea.sflag [#allocation5], %s913_s19 }
 0x17e   : > { %p1300_p0 = pnand %p1839_p11, %p1838_p12 }
 0x180   : > { %1503 = dma.done.wait (!%p1300_p0), %s914_s6, 2048  }
 0x181   : > { %1505 = vsyncadd (!%p1300_p0), %s914_s6, 4294965248  ;;  %s19_s14 = sadd.s32 1, %s1528_s14   ;;  %s1840_s9 = smov %s1512_s10 }
 0x182   : > { %p16_p5 = scmp.ge.s32.totalorder %s19_s14, 4   ;;  %s1841_s10 = smov %s1516_s11 }
 0x183   : > { %s1842_s11 = smov %s1660_s28  ;;  %s1843_s12 = smov %s1524_s13 }
 0x184   : > { %s1844_s13 = smov %s1846_s25  ;;  %18 = sbr.rel (!%p16_p5) target bundleno = 7 (0x7), region = 86 }
 0x18b   :  { %919 = vsyncpa [#allocation4], 1 }
 0x18c   :  { %921 = vsyncpa [#allocation4 + $0x1], 1 }
 0x18d   :  { %922 = vsyncpa [#allocation7], 1 }
 0x18e   :  { %923 = vsyncpa [#allocation5], 1 }
 0x18f   :  { %925 = vsyncpa [#allocation5 + $0x1], 1 }

</bundles_post_ra>
